<compile_context>
chip_gen: v7x
topology: tpu7x:2x2x1
jax: 0.10.0
libtpu: 0.0.40
codegen_flags: <defaults>
</compile_context>

<pallas_src>
import math

import jax
import jax.numpy as jnp
from jax.experimental import pallas as pl
from jax.experimental.pallas import tpu as pltpu


def _cdiv(a: int, b: int) -> int:
    return -(-a // b)


def _round_up(a: int, b: int) -> int:
    return _cdiv(a, b) * b


def _ceil_mode_out(size: int, k: int, stride: int) -> int:
    """PyTorch MaxPool2d ceil_mode=True output extent (padding=0, dilation=1)."""
    o = math.ceil((size - k) / stride) + 1
    if (o - 1) * stride >= size:  # last window must start inside the input
        o -= 1
    return o


def _window_runs(H, W, OH, OW, k, stride):
    """For each output (oh, ow) in row-major order, the contiguous runs
    (start, length) of flattened input offsets covering the valid (in-bounds)
    part of its k x k window."""
    windows = []
    for oh in range(OH):
        for ow in range(OW):
            runs = []
            w0 = ow * stride
            nw = min(k, W - w0)  # >= 1 by the ceil_mode output-size rule
            for dh in range(k):
                h = oh * stride + dh
                if h >= H:
                    break
                runs.append((h * W + w0, nw))
            windows.append(runs)
    return windows


def _make_kernel(windows, compute_dtype):
    def kernel(x_ref, o_ref):
        # x_ref: (tile_nc, H*W)   raw layout -- NC on sublanes, spatial on lanes.
        # o_ref: (OH*OW, tile_nc) lane-dense -- NC on the 128-lane axis.
        x = x_ref[...].astype(compute_dtype)
        xt = jnp.transpose(x)  # (H*W, tile_nc): single XLU transpose, NC -> lanes.
        for o_idx, runs in enumerate(windows):
            acc = None
            for start, n in runs:
                if n == 1:
                    part = xt[start:start + 1, :]
                else:
                    # contiguous sublane rows -> one sublane max-reduce (XLU)
                    part = jnp.max(xt[start:start + n, :], axis=0, keepdims=True)
                acc = part if acc is None else jnp.maximum(acc, part)  # VPU
            o_ref[o_idx:o_idx + 1, :] = acc.astype(o_ref.dtype)  # lane-dense store
    return kernel


def _maxpool_xla(x, k, stride):
    """lax.reduce_window path: reference, and fallback for tiny / huge-spatial cases."""
    N, C, H, W = x.shape
    OH = _ceil_mode_out(H, k, stride)
    OW = _ceil_mode_out(W, k, stride)
    pad_h = max((OH - 1) * stride + k - H, 0)
    pad_w = max((OW - 1) * stride + k - W, 0)
    if jnp.issubdtype(x.dtype, jnp.floating):
        init = jnp.array(-jnp.inf, x.dtype)
    else:
        init = jnp.array(jnp.iinfo(x.dtype).min, x.dtype)
    return jax.lax.reduce_window(
        x, init, jax.lax.max,
        window_dimensions=(1, 1, k, k),
        window_strides=(1, 1, stride, stride),
        padding=((0, 0), (0, 0), (0, pad_h), (0, pad_w)))


_PALLAS_MAX_HW = 2048          # input block spans the full spatial extent (lanes)
_PALLAS_MAX_OHW = 128          # window folds are statically unrolled in the kernel
_PALLAS_MIN_ELEMS = 64 * 1024  # below this, launch + layout overhead dominates


def maxpool2d_ceil(x, kernel_size=3, stride=None, *, impl="auto",
                   vmem_block_budget_bytes=8 * 1024 * 1024):
    """MaxPool2d(kernel_size, ceil_mode=True), PyTorch semantics, NCHW in/out.

    impl: "auto" (dispatch by size), "pallas" (force the Pallas kernel), "xla".
    """
    if stride is None:
        stride = kernel_size
    N, C, H, W = x.shape
    k = kernel_size
    OH = _ceil_mode_out(H, k, stride)
    OW = _ceil_mode_out(W, k, stride)
    HW, OHW, NC = H * W, OH * OW, N * C

    too_big_for_unrolled_kernel = HW > _PALLAS_MAX_HW or OHW > _PALLAS_MAX_OHW
    if impl == "xla" or too_big_for_unrolled_kernel or (
            impl == "auto" and NC * HW < _PALLAS_MIN_ELEMS):
        # TODO(synk): add a spatially tiled Pallas variant for large H*W instead of
        # falling back to lax.reduce_window.
        return _maxpool_xla(x, k, stride)

    dtype = x.dtype
    itemsize = jnp.dtype(dtype).itemsize
    # Keep the in-kernel transpose on the well-trodden 32-bit relayout path; the
    # widen/narrow casts are exact for max-pooling.
    if jnp.issubdtype(dtype, jnp.floating) and itemsize < 4:
        compute_dtype = jnp.float32
    elif jnp.issubdtype(dtype, jnp.integer) and itemsize < 4:
        compute_dtype = jnp.int32
    else:
        compute_dtype = dtype
    cbytes = jnp.dtype(compute_dtype).itemsize

    # ---- NC tile from a VMEM byte budget (not a hard-coded lane count) ----
    per_nc = (2 * _round_up(HW, 128) * itemsize     # double-buffered input blocks
              + 2 * _round_up(HW, 128) * cbytes     # loaded + transposed temporaries
              + 2 * _round_up(OHW, 8) * itemsize)   # double-buffered output blocks
    tile = max(128, vmem_block_budget_bytes // per_nc // 128 * 128)

    if NC <= 128:
        # Tiny NC: pad to one aligned 128-lane block (a few KiB).  Padded lanes are
        # zero-filled and never read back (sliced off below).
        xr = jnp.pad(x.reshape(NC, HW), ((0, 128 - NC), (0, 0)))
        nc_in = 128
        tile = 128
    else:
        xr = x.reshape(NC, HW)  # free reshape of contiguous NCHW -- no HBM copy
        nc_in = NC
        tile = min(tile, _round_up(NC, 128))
        if NC >= 256:
            # Guarantee >=2 grid steps so the NC axis can shard across v7x's 2 TCs.
            tile = min(tile, _round_up(_cdiv(NC, 2), 128))

    num_tiles = _cdiv(nc_in, tile)
    nc_out = num_tiles * tile  # output padded to whole blocks -> no ragged writes
    # (The last *input* block may be ragged; Pallas clamps the read and the garbage
    #  lanes only ever land in output columns >= NC, which are sliced off below.)

    windows = _window_runs(H, W, OH, OW, k, stride)
    kernel = _make_kernel(windows, compute_dtype)

    flops = sum(sum(n for _, n in runs) - 1 for runs in windows) * nc_out
    bytes_accessed = NC * HW * itemsize + OHW * nc_out * itemsize

    out = pl.pallas_call(
        kernel,
        out_shape=jax.ShapeDtypeStruct((OHW, nc_out), dtype),
        grid=(num_tiles,),
        in_specs=[pl.BlockSpec((tile, HW), lambda i: (i, 0))],
        out_specs=pl.BlockSpec((OHW, tile), lambda i: (0, i)),
        compiler_params=pltpu.CompilerParams(
            dimension_semantics=(pltpu.PARALLEL,),   # independent NC tiles
            vmem_limit_bytes=32 * 1024 * 1024,       # explicit; safe on v5e/v6e/v7x
        ),
        cost_estimate=pl.CostEstimate(
            flops=flops, transcendentals=0, bytes_accessed=bytes_accessed),
    )(xr)

    # Columns >= NC hold padding/garbage -- drop them.  The trailing transpose touches
    # only the small (1/k^2-sized) output; the input itself was never copied.
    return out[:, :NC].T.reshape(N, C, OH, OW)


if __name__ == "__main__":
    key = jax.random.PRNGKey(0)

    # The PyTorch script reshapes its input to (-1, 1, 5, 5); use batch=2 here.
    x = jax.random.normal(key, (2 * 1 * 5 * 5,), dtype=jnp.float32).reshape(-1, 1, 5, 5)
    out = jax.block_until_ready(maxpool2d_ceil(x, kernel_size=3, impl="pallas"))
    ref = _maxpool_xla(x, 3, 3)
    assert out.shape == (2, 1, 2, 2), out.shape
    assert jnp.allclose(out, ref), "Pallas maxpool mismatch (module-shaped case)"

    # Larger case: multi-step NC grid with a ragged last input block (300 % 128 != 0);
    # exercises the budget-derived tile and the >=2-step (v7x 2-TC) cap.
    x2 = jax.random.normal(jax.random.PRNGKey(1), (300, 1, 5, 5), dtype=jnp.float32)
    out2 = jax.block_until_ready(maxpool2d_ceil(x2, kernel_size=3, impl="pallas"))
    ref2 = _maxpool_xla(x2, 3, 3)
    assert out2.shape == (300, 1, 2, 2), out2.shape
    assert jnp.allclose(out2, ref2), "Pallas maxpool mismatch (multi-tile case)"

    # "auto" dispatch: this tiny workload short-circuits to lax.reduce_window.
    out3 = jax.block_until_ready(maxpool2d_ceil(x, kernel_size=3))
    assert jnp.allclose(out3, ref)

    print("KERNEL_OK")
</pallas_src>

<mosaic_0001>
module attributes {stable_mosaic.version = 11 : i64} {
  func.func @kernel(%arg0: i32, %arg1: memref<128x25xf32, #tpu.memory_space<vmem>>, %arg2: memref<4x128xf32, #tpu.memory_space<vmem>>) attributes {dimension_semantics = [#tpu.dimension_semantics<parallel>], iteration_bounds = array<i64: 1>, scalar_prefetch = 0 : i64, scratch_operands = 0 : i64, tpu.core_type = #tpu.core_type<tc>, window_params = [{transform_indices = @transform_0, window_bounds = array<i64: 128, 25>}, {transform_indices = @transform_1, window_bounds = array<i64: 4, 128>}]} {
    %c0 = arith.constant 0 : index
    %c0_0 = arith.constant 0 : index
    %0 = vector.load %arg1[%c0, %c0_0] : memref<128x25xf32, #tpu.memory_space<vmem>>, vector<128x25xf32>
    %1 = tpu.transpose %0, [1, 0] : vector<128x25xf32> -> vector<25x128xf32>
    %2 = vector.extract_strided_slice %1 {offsets = [0, 0], sizes = [3, 128], strides = [1, 1]} : vector<25x128xf32> to vector<3x128xf32>
    %cst = arith.constant dense<0xFF800000> : vector<128xf32>
    %3 = vector.multi_reduction <maximumf>, %2, %cst [0] : vector<3x128xf32> to vector<128xf32>
    %4 = vector.shape_cast %3 : vector<128xf32> to vector<1x128xf32>
    %5 = vector.extract_strided_slice %1 {offsets = [5, 0], sizes = [3, 128], strides = [1, 1]} : vector<25x128xf32> to vector<3x128xf32>
    %cst_1 = arith.constant dense<0xFF800000> : vector<128xf32>
    %6 = vector.multi_reduction <maximumf>, %5, %cst_1 [0] : vector<3x128xf32> to vector<128xf32>
    %7 = vector.shape_cast %6 : vector<128xf32> to vector<1x128xf32>
    %8 = arith.maximumf %4, %7 : vector<1x128xf32>
    %9 = vector.extract_strided_slice %1 {offsets = [10, 0], sizes = [3, 128], strides = [1, 1]} : vector<25x128xf32> to vector<3x128xf32>
    %cst_2 = arith.constant dense<0xFF800000> : vector<128xf32>
    %10 = vector.multi_reduction <maximumf>, %9, %cst_2 [0] : vector<3x128xf32> to vector<128xf32>
    %11 = vector.shape_cast %10 : vector<128xf32> to vector<1x128xf32>
    %12 = arith.maximumf %8, %11 : vector<1x128xf32>
    %c0_3 = arith.constant 0 : index
    %c0_4 = arith.constant 0 : index
    %13 = vector.load %arg2[%c0_3, %c0_4] : memref<4x128xf32, #tpu.memory_space<vmem>>, vector<1x128xf32>
    tpu.vector_store %arg2[%c0_3, %c0_4], %12 {strides = array<i32>} : memref<4x128xf32, #tpu.memory_space<vmem>>, vector<1x128xf32>,
    %14 = vector.extract_strided_slice %1 {offsets = [3, 0], sizes = [2, 128], strides = [1, 1]} : vector<25x128xf32> to vector<2x128xf32>
    %cst_5 = arith.constant dense<0xFF800000> : vector<128xf32>
    %15 = vector.multi_reduction <maximumf>, %14, %cst_5 [0] : vector<2x128xf32> to vector<128xf32>
    %16 = vector.shape_cast %15 : vector<128xf32> to vector<1x128xf32>
    %17 = vector.extract_strided_slice %1 {offsets = [8, 0], sizes = [2, 128], strides = [1, 1]} : vector<25x128xf32> to vector<2x128xf32>
    %cst_6 = arith.constant dense<0xFF800000> : vector<128xf32>
    %18 = vector.multi_reduction <maximumf>, %17, %cst_6 [0] : vector<2x128xf32> to vector<128xf32>
    %19 = vector.shape_cast %18 : vector<128xf32> to vector<1x128xf32>
    %20 = arith.maximumf %16, %19 : vector<1x128xf32>
    %21 = vector.extract_strided_slice %1 {offsets = [13, 0], sizes = [2, 128], strides = [1, 1]} : vector<25x128xf32> to vector<2x128xf32>
    %cst_7 = arith.constant dense<0xFF800000> : vector<128xf32>
    %22 = vector.multi_reduction <maximumf>, %21, %cst_7 [0] : vector<2x128xf32> to vector<128xf32>
    %23 = vector.shape_cast %22 : vector<128xf32> to vector<1x128xf32>
    %24 = arith.maximumf %20, %23 : vector<1x128xf32>
    %c1 = arith.constant 1 : index
    %c0_8 = arith.constant 0 : index
    %25 = vector.load %arg2[%c1, %c0_8] : memref<4x128xf32, #tpu.memory_space<vmem>>, vector<1x128xf32>
    tpu.vector_store %arg2[%c1, %c0_8], %24 {strides = array<i32>} : memref<4x128xf32, #tpu.memory_space<vmem>>, vector<1x128xf32>,
    %26 = vector.extract_strided_slice %1 {offsets = [15, 0], sizes = [3, 128], strides = [1, 1]} : vector<25x128xf32> to vector<3x128xf32>
    %cst_9 = arith.constant dense<0xFF800000> : vector<128xf32>
    %27 = vector.multi_reduction <maximumf>, %26, %cst_9 [0] : vector<3x128xf32> to vector<128xf32>
    %28 = vector.shape_cast %27 : vector<128xf32> to vector<1x128xf32>
    %29 = vector.extract_strided_slice %1 {offsets = [20, 0], sizes = [3, 128], strides = [1, 1]} : vector<25x128xf32> to vector<3x128xf32>
    %cst_10 = arith.constant dense<0xFF800000> : vector<128xf32>
    %30 = vector.multi_reduction <maximumf>, %29, %cst_10 [0] : vector<3x128xf32> to vector<128xf32>
    %31 = vector.shape_cast %30 : vector<128xf32> to vector<1x128xf32>
    %32 = arith.maximumf %28, %31 : vector<1x128xf32>
    %c2 = arith.constant 2 : index
    %c0_11 = arith.constant 0 : index
    %33 = vector.load %arg2[%c2, %c0_11] : memref<4x128xf32, #tpu.memory_space<vmem>>, vector<1x128xf32>
    tpu.vector_store %arg2[%c2, %c0_11], %32 {strides = array<i32>} : memref<4x128xf32, #tpu.memory_space<vmem>>, vector<1x128xf32>,
    %34 = vector.extract_strided_slice %1 {offsets = [18, 0], sizes = [2, 128], strides = [1, 1]} : vector<25x128xf32> to vector<2x128xf32>
    %cst_12 = arith.constant dense<0xFF800000> : vector<128xf32>
    %35 = vector.multi_reduction <maximumf>, %34, %cst_12 [0] : vector<2x128xf32> to vector<128xf32>
    %36 = vector.shape_cast %35 : vector<128xf32> to vector<1x128xf32>
    %37 = vector.extract_strided_slice %1 {offsets = [23, 0], sizes = [2, 128], strides = [1, 1]} : vector<25x128xf32> to vector<2x128xf32>
    %cst_13 = arith.constant dense<0xFF800000> : vector<128xf32>
    %38 = vector.multi_reduction <maximumf>, %37, %cst_13 [0] : vector<2x128xf32> to vector<128xf32>
    %39 = vector.shape_cast %38 : vector<128xf32> to vector<1x128xf32>
    %40 = arith.maximumf %36, %39 : vector<1x128xf32>
    %c3 = arith.constant 3 : index
    %c0_14 = arith.constant 0 : index
    %41 = vector.load %arg2[%c3, %c0_14] : memref<4x128xf32, #tpu.memory_space<vmem>>, vector<1x128xf32>
    tpu.vector_store %arg2[%c3, %c0_14], %40 {strides = array<i32>} : memref<4x128xf32, #tpu.memory_space<vmem>>, vector<1x128xf32>,
    return
  }
  func.func @transform_0(%arg0: i32) -> (i32, i32) {
    %c0_i32 = arith.constant 0 : i32
    %c0_i32_0 = arith.constant 0 : i32
    return %arg0, %c0_i32 : i32, i32
  }
  func.func @transform_1(%arg0: i32) -> (i32, i32) {
    %c0_i32 = arith.constant 0 : i32
    %c0_i32_0 = arith.constant 0 : i32
    return %c0_i32, %arg0 : i32, i32
  }
}

</mosaic_0001>

<bundles_post_ra>
// kernel: tpu_custom_call.1
= control target key start
LH: loop header
LB: loop body
LE: loop exit
PB: predicated region body
PF: predicated region fallthrough
CT: control target
= control target key end

     0   :  { %s268_s0 = inlined_call_operand.vmem [shape: f32[128,25], index: 0, kind: input, shape index: {}]   ;;  %s269_s1 = inlined_call_operand.hbm [shape: f32[4,128], index: 1, kind: output, shape index: {}]  }
   0x1   :  { %v9_v0 = vld [vmem:[%s268_s0] sm:$0xff]  ;;  %v10_v1 = vld [vmem:[%s268_s0 + $0x8] sm:$0xff] }
   0x2   :  { %25 = vxpose.xlu0.b32.start [1/16] (narrow) %v9_v0, 32 }
   0x6   :  { %26 = vxpose.xlu0.b32.cont [2/16] (narrow) %v10_v1, 32 }
   0x7   :  { %6 = vsyncpa [#allocation3], 0  ;;  %v11_v2 = vld [vmem:[%s268_s0 + $0x10] sm:$0xff]  ;;  %v12_v3 = vld [vmem:[%s268_s0 + $0x18] sm:$0xff]  ;;  %vm57_vm0 = vcmask 1042432   ;;  %vm65_vm1 = vcmask 1047557  }
   0x8   :  { %v13_v4 = vld [vmem:[%s268_s0 + $0x20] sm:$0xff]  ;;  %v14_v5 = vld [vmem:[%s268_s0 + $0x28] sm:$0xff]  ;;  %v15_v6 = vld [vmem:[%s268_s0 + $0x30] sm:$0xff]  ;;  %vm84_vm2 = vcmask 1044483   ;;  %vm74_vm3 = vcmask 1044482   ;;  %vm92_vm4 = vcmask 1041408  }
   0x9   :  { %v16_v7 = vld [vmem:[%s268_s0 + $0x38] sm:$0xff]  ;;  %v17_v8 = vld [vmem:[%s268_s0 + $0x40] sm:$0xff]  ;;  %v18_v9 = vld [vmem:[%s268_s0 + $0x48] sm:$0xff]  ;;  %vm101_vm5 = vcmask 1046533   ;;  %vm111_vm6 = vcmask 1047559   ;;  %vm121_vm7 = vcmask 1046532  }
   0xa   :  { %27 = vxpose.xlu0.b32.cont [3/16] (narrow) %v11_v2, 32  ;;  %v19_v10 = vld [vmem:[%s268_s0 + $0x50] sm:$0xff]  ;;  %v20_v11 = vld [vmem:[%s268_s0 + $0x58] sm:$0xff]  ;;  %v21_v12 = vld [vmem:[%s268_s0 + $0x60] sm:$0xff]  ;;  %vm131_vm8 = vcmask 1043458   ;;  %vm140_vm9 = vcmask 1040384  }
   0xb   :  { %v22_v13 = vld [vmem:[%s268_s0 + $0x68] sm:$0xff]  ;;  %v23_v14 = vld [vmem:[%s268_s0 + $0x70] sm:$0xff]  ;;  %v24_v15 = vld [vmem:[%s268_s0 + $0x78] sm:$0xff]  ;;  %s190_s0 = smov [#allocation2]  }
   0xc   :  { %s157_s9 = sshll.u32 %s190_s0, 4  ;;  %s158_s9 = int_to_ptr.vmem [resolvable:$true] %s157_s9 }
   0xd   :  { %s166_s10 = scalar_lea.vmem %s158_s9, 64  ;;  %p171_p1 = scmp.lt.s32.totalorder %s158_s9, %s158_s9 }
   0xe   :  { %28 = vxpose.xlu0.b32.cont [4/16] (narrow) %v12_v3, 32  ;;  %p167_p0 = scmp.ne.s32.totalorder %s158_s9, %s166_s10  ;;  %p172_p2 = scmp.lt.s32.totalorder %s166_s10, %s166_s10 }
  0x10   :  { %p173_p3 = por %p172_p2, %p171_p1 }
  0x12   :  { %29 = vxpose.xlu0.b32.cont [5/16] (narrow) %v13_v4, 32  ;;  %p174_p4 = pnand %p173_p3, %p167_p0 }
  0x16   :  { %30 = vxpose.xlu0.b32.cont [6/16] (narrow) %v14_v5, 32 }
  0x1a   :  { %31 = vxpose.xlu0.b32.cont [7/16] (narrow) %v15_v6, 32 }
  0x1e   :  { %32 = vxpose.xlu0.b32.cont [8/16] (narrow) %v16_v7, 32 }
  0x22   :  { %33 = vxpose.xlu0.b32.cont [9/16] (narrow) %v17_v8, 32 }
  0x26   :  { %34 = vxpose.xlu0.b32.cont [10/16] (narrow) %v18_v9, 32 }
  0x2a   :  { %35 = vxpose.xlu0.b32.cont [11/16] (narrow) %v19_v10, 32 }
  0x2e   :  { %36 = vxpose.xlu0.b32.cont [12/16] (narrow) %v20_v11, 32 }
  0x32   :  { %37 = vxpose.xlu0.b32.cont [13/16] (narrow) %v21_v12, 32 }
  0x36   :  { %38 = vxpose.xlu0.b32.cont [14/16] (narrow) %v22_v13, 32 }
  0x3a   :  { %39 = vxpose.xlu0.b32.cont [15/16] (narrow) %v23_v14, 32 }
  0x3e   :  { %40 = vxpose.xlu0.b32.end [16/16] (narrow) %v24_v15, 32 }
  0x82   :  { %v41_v16 = vpop.trf.xlu0 }
  0x83   :  { %v58_v17 = vsel %vm57_vm0, %v41_v16, -inf  ;;  %v66_v18 = vsel %vm65_vm1, %v41_v16, -inf  ;;  %v85_v19 = vsel %vm84_vm2, %v41_v16, -inf }
  0x84   :  { %v59_v20 = vrot.slane %v58_v17, 4  ;;  %v67_v21 = vrot.slane %v66_v18, 4  ;;  %v86_v22 = vrot.slane %v85_v19, 4 }
  0x86   :  { %v60_v23 = vmax.f32 %v58_v17, %v59_v20  ;;  %v68_v24 = vmax.f32 %v66_v18, %v67_v21  ;;  %v87_v25 = vmax.f32 %v85_v19, %v86_v22  ;;  %v42_v26 = vpop.trf.xlu0 }
  0x87   :  { %v75_v27 = vsel %vm74_vm3, %v42_v26, -inf  ;;  %v93_v28 = vsel %vm92_vm4, %v42_v26, -inf  ;;  %v102_v29 = vsel %vm101_vm5, %v42_v26, -inf  ;;  %v112_v44 = vsel %vm111_vm6, %v42_v26, -inf }
  0x88   :  { %v61_v30 = vrot.slane %v60_v23, 2  ;;  %v69_v31 = vrot.slane %v68_v24, 2  ;;  %v88_v32 = vrot.slane %v87_v25, 2  ;;  %v76_v33 = vrot.slane %v75_v27, 4 }
  0x89   :  { %v94_v34 = vrot.slane %v93_v28, 4  ;;  %v103_v35 = vrot.slane %v102_v29, 4 }
  0x8a   :  { %v62_v36 = vmax.f32 %v60_v23, %v61_v30  ;;  %v70_v37 = vmax.f32 %v68_v24, %v69_v31  ;;  %v89_v38 = vmax.f32 %v87_v25, %v88_v32  ;;  %v77_v39 = vmax.f32 %v75_v27, %v76_v33  ;;  %v43_v40 = vpop.trf.xlu0 }
  0x8b   :  { %v95_v41 = vmax.f32 %v93_v28, %v94_v34  ;;  %v104_v42 = vmax.f32 %v102_v29, %v103_v35  ;;  %v122_v43 = vsel %vm121_vm7, %v43_v40, -inf  ;;  %v113_v48 = vsel %vm92_vm4, %v43_v40, -inf }
  0x8c   :  { %v63_v45 = vrot.slane %v62_v36, 1  ;;  %v71_v46 = vrot.slane %v70_v37, 1  ;;  %v78_v47 = vrot.slane %v77_v39, 2  ;;  %v123_v51 = vrot.slane %v122_v43, 4 }
  0x8d   :  { %v96_v49 = vrot.slane %v95_v41, 2  ;;  %v105_v50 = vrot.slane %v104_v42, 2  ;;  %v132_v52 = vsel %vm131_vm8, %v43_v40, -inf  ;;  %v90_v55 = vrot.slane %v89_v38, 1 }
  0x8e   :  { %v64_v53 = vmax.f32 %v62_v36, %v63_v45  ;;  %v72_v54 = vmax.f32 %v70_v37, %v71_v46  ;;  %v79_v56 = vmax.f32 %v77_v39, %v78_v47  ;;  %v124_v59 = vmax.f32 %v122_v43, %v123_v51  ;;  %v44_v61 = vpop.trf.xlu0 }
  0x8f   :  { %v97_v57 = vmax.f32 %v95_v41, %v96_v49  ;;  %v106_v58 = vmax.f32 %v104_v42, %v105_v50  ;;  %v133_v60 = vrot.slane %v132_v52, 4  ;;  %v114_v63 = vmax.f32 %v112_v44, %v113_v48 }
  0x90   :  { %v80_v62 = vrot.slane %v79_v56, 1  ;;  %v125_v2 = vrot.slane %v124_v59, 2  ;;  %v73_v4 = vmax.f32 %v64_v53, %v72_v54  ;;  %v141_v7 = vsel %vm140_vm9, %v44_v61, -inf }
  0x91   :  { %v98_v0 = vrot.slane %v97_v57, 1  ;;  %v107_v1 = vrot.slane %v106_v58, 1  ;;  %v134_v3 = vmax.f32 %v132_v52, %v133_v60  ;;  %v115_v6 = vrot.slane %v114_v63, 4 }
  0x92   :  { %v81_v5 = vmax.f32 %v79_v56, %v80_v62  ;;  %v91_v8 = vmax.f32 %v89_v38, %v90_v55  ;;  %v126_v10 = vmax.f32 %v124_v59, %v125_v2  ;;  %v139_v11 = vsel %vm111_vm6, %v43_v40, -inf }
  0x93   :  { %v99_v9 = vmax.f32 %v97_v57, %v98_v0  ;;  %v135_v12 = vrot.slane %v134_v3, 2  ;;  %v116_v13 = vmax.f32 %v114_v63, %v115_v6  ;;  %v142_v14 = vmax.f32 %v139_v11, %v141_v7 }
  0x94   :  { %v82_v15 = vmax.f32 %v73_v4, %v81_v5  ;;  %v108_v16 = vmax.f32 %v106_v58, %v107_v1  ;;  %v127_v21 = vrot.slane %v126_v10, 1 }
  0x95   :  { %v100_v17 = vmax.f32 %v91_v8, %v99_v9  ;;  %v117_v18 = vrot.slane %v116_v13, 2  ;;  %v143_v19 = vrot.slane %v142_v14, 4  ;;  %v136_v22 = vmax.f32 %v134_v3, %v135_v12 }
  0x96   :  { %83 = vst [vmem:[#allocation2] sm:$0x1] %v82_v15  ;;  %v128_v27 = vmax.f32 %v126_v10, %v127_v21 }
  0x97   :  { %v109_v20 = vmax.f32 %v100_v17, %v108_v16  ;;  %v118_v23 = vmax.f32 %v116_v13, %v117_v18  ;;  %v144_v24 = vmax.f32 %v142_v14, %v143_v19  ;;  %v137_v28 = vrot.slane %v136_v22, 1 }
  0x99   :  { %110 = vst [vmem:[#allocation2 + $0x1] sm:$0x1] %v109_v20  ;;  %v119_v25 = vrot.slane %v118_v23, 1  ;;  %v145_v26 = vrot.slane %v144_v24, 2  ;;  %v138_v33 = vmax.f32 %v136_v22, %v137_v28 }
  0x9b   :  { %v146_v29 = vmax.f32 %v144_v24, %v145_v26  ;;  %v120_v30 = vmax.f32 %v118_v23, %v119_v25 }
  0x9d   :  { %v147_v31 = vrot.slane %v146_v29, 1  ;;  %v129_v32 = vmax.f32 %v120_v30, %v128_v27 }
  0x9f   :  { %v148_v34 = vmax.f32 %v146_v29, %v147_v31  ;;  %130 = vst [vmem:[#allocation2 + $0x2] sm:$0x1] %v129_v32 }
  0xa1   :  { %v149_v35 = vmax.f32 %v138_v33, %v148_v34 }
  0xa3   :  { %150 = vst [vmem:[#allocation2 + $0x3] sm:$0x1] %v149_v35 }
  0xa4   :  { %177 = shalt.err (!%p174_p4)
}
  0xa5   :  { %s178_s13 = scalar_lea.hbm %s269_s1, 64 }
  0xa6   :  { %p179_p5 = scmp.ne.s32.totalorder %s269_s1, %s178_s13  ;;  %p182_p6 = scmp.lt.u32.totalorder %s178_s13, %s269_s1 }
  0xa8   :  { %p184_p7 = pnand %p182_p6, %p179_p5 }
  0xaa   :  { %187 = shalt.err (!%p184_p7)
}
  0xab   :  { %160 = dma.vmem_to_hbm [thread:$0]  %s158_s9, 64, %s269_s1, [#allocation3]  }
  0xac   :  { %188 = dma.done.wait [#allocation3], 64  }
  0xad   :  { %189 = vsyncadd [#allocation3], 4294967232 }
  0xae   :  { %164 = vsyncpa [#allocation3], 1 }

</bundles_post_ra>
